<compile_context>
chip_gen: v7x
topology: tpu7x:2x2x1
jax: 0.10.0
libtpu: 0.0.40
codegen_flags: <defaults>
</compile_context>

<pallas_src>
import jax
import jax.numpy as jnp
from jax.experimental import pallas as pl
from jax.experimental.pallas import tpu as pltpu


# ----------------------------------------------------------------------------
# Kernel: fill one (TILE_R, TILE_C) output tile with uniform [0, 1) floats.
# ----------------------------------------------------------------------------
def random_scores_kernel(seed_ref, o_ref):
    i = pl.program_id(0)
    j = pl.program_id(1)
    tr, tc = o_ref.shape

    # Global (row, col) position of every element in this tile.
    row = jax.lax.broadcasted_iota(jnp.int32, (tr, tc), 0) + i * tr
    col = jax.lax.broadcasted_iota(jnp.int32, (tr, tc), 1) + j * tc
    total_cols = pl.num_programs(1) * tc          # padded-grid row stride
    idx = (row * total_cols + col).astype(jnp.uint32)

    # Stateless counter-based PRNG: mix the global index with the seed
    # (murmur3 fmix32 / splitmix32-style avalanche).  Pure VPU bitwise +
    # integer-multiply ops; no hardware PRNG state needed.
    seed = seed_ref[0].astype(jnp.uint32) * jnp.uint32(0x9E3779B9)
    h = idx + seed
    h = h ^ (h >> 16)
    h = h * jnp.uint32(0x85EBCA6B)
    h = h ^ (h >> 13)
    h = h * jnp.uint32(0xC2B2AE35)
    h = h ^ (h >> 16)

    # Top 23 bits -> uniform [0, 1) with 2^-23 resolution (torch.rand range).
    mant = (h >> 9).astype(jnp.int32)             # values in [0, 2^23)
    o_ref[...] = mant.astype(jnp.float32) * jnp.float32(1.0 / 8388608.0)


# ----------------------------------------------------------------------------
# Wrapper: RandomBaseline.forward
# ----------------------------------------------------------------------------
def random_baseline_forward(seed, image_features, question_wids, answer_aids,
                            knn_size):
    # question_wids / answer_aids are accepted but unused, exactly as in the
    # PyTorch forward.
    del question_wids, answer_aids
    batch_size = image_features.shape[0]
    B, K = batch_size, knn_size

    # Sublane/lane-dense tiles (rows multiple of 8, cols multiple of 128),
    # capped at ~2 MiB f32 per tile so double-buffered writeback stays tiny
    # relative to VMEM on all of v5e/v6e/v7x.
    tile_r = min(512, pl.cdiv(B, 8) * 8)
    tile_c = min(1024, pl.cdiv(K, 128) * 128)
    grid = (pl.cdiv(B, tile_r), pl.cdiv(K, tile_c))

    return pl.pallas_call(
        random_scores_kernel,
        out_shape=jax.ShapeDtypeStruct((B, K), jnp.float32),
        grid=grid,
        in_specs=[pl.BlockSpec(memory_space=pltpu.MemorySpace.SMEM)],
        out_specs=pl.BlockSpec((tile_r, tile_c), lambda i, j: (i, j)),
        compiler_params=pltpu.CompilerParams(
            dimension_semantics=("parallel", "parallel")),
    )(seed)


# ----------------------------------------------------------------------------
if __name__ == "__main__":
    B = 2          # batch
    KNN = 4        # knn_size
    DIM_V = 32     # image feature dim (unused by the forward, shape only)
    SEQ = 8        # question length  (unused by the forward, shape only)
    VOCAB = 50
    NUM_ANS = 16

    key = jax.random.PRNGKey(0)
    ks = jax.random.split(key, 3)

    image_features = jax.random.normal(ks[0], (B, KNN + 1, DIM_V), jnp.float32)
    question_wids = jax.random.randint(ks[1], (B, SEQ), 0, VOCAB)
    answer_aids = jax.random.randint(ks[2], (B,), 0, NUM_ANS)

    seed = jnp.array([0], dtype=jnp.int32)   # deterministic stand-in for torch RNG state

    scores = random_baseline_forward(seed, image_features, question_wids,
                                     answer_aids, KNN)
    jax.block_until_ready(scores)

    assert scores.shape == (B, KNN)
    assert scores.dtype == jnp.float32
    # torch.rand semantics: uniform on [0, 1)
    assert bool(jnp.all((scores >= 0.0) & (scores < 1.0)))
    print("KERNEL_OK")
</pallas_src>

<mosaic_0001>
module attributes {stable_mosaic.version = 11 : i64} {
  func.func @random_scores_kernel(%arg0: i32, %arg1: i32, %arg2: memref<1xi32, #tpu.memory_space<smem>>, %arg3: memref<8x128xf32, #tpu.memory_space<vmem>>) attributes {dimension_semantics = [#tpu.dimension_semantics<parallel>, #tpu.dimension_semantics<parallel>], iteration_bounds = array<i64: 1, 1>, scalar_prefetch = 0 : i64, scratch_operands = 0 : i64, tpu.core_type = #tpu.core_type<tc>, window_params = [{transform_indices = @transform_0, window_bounds = array<i64: 1>}, {transform_indices = @transform_1, window_bounds = array<i64: 8, 128>}]} {
    %0 = tpu.iota {dimensions = array<i32: 0>} : vector<8x128xi32>
    %c8_i32 = arith.constant 8 : i32
    %1 = arith.muli %arg0, %c8_i32 : i32
    %2 = vector.broadcast %1 : i32 to vector<8x128xi32>
    %3 = arith.addi %0, %2 : vector<8x128xi32>
    %4 = tpu.iota {dimensions = array<i32: 1>} : vector<8x128xi32>
    %c128_i32 = arith.constant 128 : i32
    %5 = arith.muli %arg1, %c128_i32 : i32
    %6 = vector.broadcast %5 : i32 to vector<8x128xi32>
    %7 = arith.addi %4, %6 : vector<8x128xi32>
    %c128_i32_0 = arith.constant 128 : i32
    %8 = vector.broadcast %c128_i32_0 : i32 to vector<8x128xi32>
    %9 = arith.muli %3, %8 : vector<8x128xi32>
    %10 = arith.addi %9, %7 : vector<8x128xi32>
    %c0 = arith.constant 0 : index
    %11 = memref.load %arg2[%c0] : memref<1xi32, #tpu.memory_space<smem>>
    %c-1640531527_i32 = arith.constant -1640531527 : i32
    %12 = arith.muli %11, %c-1640531527_i32 : i32
    %13 = vector.broadcast %12 : i32 to vector<8x128xi32>
    %14 = arith.addi %10, %13 : vector<8x128xi32>
    %c16_i32 = arith.constant 16 : i32
    %15 = vector.broadcast %c16_i32 : i32 to vector<8x128xi32>
    %16 = arith.shrui %14, %15 : vector<8x128xi32>
    %17 = arith.xori %14, %16 : vector<8x128xi32>
    %c-2048144789_i32 = arith.constant -2048144789 : i32
    %18 = vector.broadcast %c-2048144789_i32 : i32 to vector<8x128xi32>
    %19 = arith.muli %17, %18 : vector<8x128xi32>
    %c13_i32 = arith.constant 13 : i32
    %20 = vector.broadcast %c13_i32 : i32 to vector<8x128xi32>
    %21 = arith.shrui %19, %20 : vector<8x128xi32>
    %22 = arith.xori %19, %21 : vector<8x128xi32>
    %c-1028477387_i32 = arith.constant -1028477387 : i32
    %23 = vector.broadcast %c-1028477387_i32 : i32 to vector<8x128xi32>
    %24 = arith.muli %22, %23 : vector<8x128xi32>
    %c16_i32_1 = arith.constant 16 : i32
    %25 = vector.broadcast %c16_i32_1 : i32 to vector<8x128xi32>
    %26 = arith.shrui %24, %25 : vector<8x128xi32>
    %27 = arith.xori %24, %26 : vector<8x128xi32>
    %c9_i32 = arith.constant 9 : i32
    %28 = vector.broadcast %c9_i32 : i32 to vector<8x128xi32>
    %29 = arith.shrui %27, %28 : vector<8x128xi32>
    %30 = arith.sitofp %29 : vector<8x128xi32> to vector<8x128xf32>
    %cst = arith.constant 1.1920929E-7 : f32
    %31 = vector.broadcast %cst : f32 to vector<8x128xf32>
    %32 = arith.mulf %30, %31 : vector<8x128xf32>
    %c0_2 = arith.constant 0 : index
    %c0_3 = arith.constant 0 : index
    %33 = vector.load %arg3[%c0_2, %c0_3] : memref<8x128xf32, #tpu.memory_space<vmem>>, vector<8x128xf32>
    tpu.vector_store %arg3[%c0_2, %c0_3], %32 {strides = array<i32>} : memref<8x128xf32, #tpu.memory_space<vmem>>, vector<8x128xf32>,
    return
  }
  func.func @transform_0(%arg0: i32, %arg1: i32) -> i32 {
    %c0_i32 = arith.constant 0 : i32
    %c0_i32_0 = arith.constant 0 : i32
    return %c0_i32 : i32
  }
  func.func @transform_1(%arg0: i32, %arg1: i32) -> (i32, i32) {
    %c0_i32 = arith.constant 0 : i32
    return %arg0, %arg1 : i32, i32
  }
}

</mosaic_0001>

<bundles_post_ra>
// kernel: tpu_custom_call.1
= control target key start
LH: loop header
LB: loop body
LE: loop exit
PB: predicated region body
PF: predicated region fallthrough
CT: control target
= control target key end

     0   :  { %7 = vsyncpa [#allocation4], 0  ;;  %v10_v0 = vlaneseq  ;;  %s109_s0 = inlined_call_operand.<no memory space> [shape: s32[1], index: 0, kind: input, shape index: {}]   ;;  %s110_s1 = inlined_call_operand.hbm [shape: f32[2,4], index: 1, kind: output, shape index: {}]  }
   0x1   :  { %s23_s8 = smul.u32 2654435769, %s109_s0 }
   0x2   :  { %v11_v1 = vshrl.u32 %v10_v0, 7  ;;  %v16_v2 = vand.u32 127, %v10_v0 }
   0x3   :  { %v24_v4 = vstv %s23_s8 }
   0x4   :  { %v20_v3 = vmul.u32 128, %v11_v1 }
   0x6   :  { %v21_v5 = vadd.s32 %v20_v3, %v16_v2 }
   0x8   :  { %v25_v6 = vadd.s32 %v24_v4, %v21_v5 }
   0xa   :  { %v26_v7 = vshrl.u32 %v25_v6, 16 }
   0xc   :  { %v27_v8 = vxor.u32 %v26_v7, %v25_v6 }
   0xe   :  { %v28_v9 = vmul.u32 2246822507, %v27_v8 }
  0x10   :  { %v29_v10 = vshrl.u32 %v28_v9, 13 }
  0x12   :  { %v30_v11 = vxor.u32 %v29_v10, %v28_v9 }
  0x14   :  { %v31_v12 = vmul.u32 3266489909, %v30_v11 }
  0x16   :  { %v32_v13 = vshrl.u32 %v31_v12, 16 }
  0x18   :  { %v33_v14 = vxor.u32 %v32_v13, %v31_v12 }
  0x1a   :  { %v34_v15 = vshrl.u32 %v33_v14, 9 }
  0x1c   :  { %v35_v16 = vcvt.s32.f32 %v34_v15 }
  0x1e   :  { %v36_v17 = vmul.f32 1.1920929e-07, %v35_v16 }
  0x20   :  { %37 = vst [vmem:[#allocation3] sm:$0xff] %v36_v17 }
  0x21   :  { %42 = vsyncadd [#allocation4], 96  ;;  %s81_s0 = smov [#allocation3]  }
  0x22   :  { %s43_s9 = sshll.u32 %s81_s0, 4  ;;  %s44_s9 = int_to_ptr.vmem [resolvable:$true] %s43_s9 }
  0x23   :  { %s57_s10 = scalar_lea.vmem %s44_s9, 32  ;;  %s61_s11 = scalar_lea.vmem %s44_s9, 128 }
  0x24   :  { %p58_p0 = scmp.ne.s32.totalorder %s44_s9, %s57_s10  ;;  %p62_p1 = scmp.lt.s32.totalorder %s44_s9, %s44_s9 }
  0x25   :  { %p63_p2 = scmp.lt.s32.totalorder %s61_s11, %s57_s10 }
  0x27   :  { %p64_p3 = por %p63_p2, %p62_p1 }
  0x29   :  { %p65_p4 = pnand %p64_p3, %p58_p0 }
  0x2b   :  { %68 = shalt.err (!%p65_p4)
}
  0x2c   :  { %s69_s14 = scalar_lea.hbm %s110_s1, 32 }
  0x2d   :  { %p70_p5 = scmp.ne.s32.totalorder %s110_s1, %s69_s14  ;;  %p73_p6 = scmp.lt.u32.totalorder %s69_s14, %s110_s1 }
  0x2f   :  { %p75_p7 = pnand %p73_p6, %p70_p5 }
  0x31   :  { %78 = shalt.err (!%p75_p7)
}
  0x32   :  { %s82_s19 = smov 32   ;;  %s83_s20 = smov 2  }
  0x33   :  { %49 = dma.vmem_to_hbm [thread:$0]  %s44_s9, 32, %s110_s1, [#allocation4], %s82_s19, %s82_s19, %s83_s20  }
  0x34   :  { %79 = dma.done.wait [#allocation4], 128  }
  0x35   :  { %80 = vsyncadd [#allocation4], 4294967168 }
  0x36   :  { %53 = vsyncpa [#allocation4], 1 }

</bundles_post_ra>
